<compile_context>
chip_gen: v7x
topology: tpu7x:2x2x1
jax: 0.10.0
libtpu: 0.0.40
codegen_flags: <defaults>
</compile_context>

<pallas_src>
import functools
import math

import jax
import jax.numpy as jnp
from jax.experimental import pallas as pl
from jax.experimental.pallas import tpu as pltpu

_EPS_SQ = 1e-16               # floor on the squared lhs norm (== 1e-8 floor on the
                              # norm, matching torch cosine_similarity eps)
_NORM_EPS = 1e-8              # floor on the item norm in the offline precompute
_LHS_DTYPE = jnp.bfloat16     # MXU operand dtype for the cosine stage (f32 accum)


# ------------- kernel 1: fused MLP + one-hot user gather + row norm -------------

def _fused_mlp_kernel(*refs, n1, n2, d_x, d_xu, d_emb, user_num, eps):
    it = iter(refs)
    idx_ref = next(it)                                   # [B, 1] int32
    t_ref, x_ref, xu_ref = next(it), next(it), next(it)  # [B,emb],[B,dx],[B,dxu]
    w_emb, b_emb = next(it), next(it)
    lyr1 = [(next(it), next(it)) for _ in range(n1)]
    lyr2 = [(next(it), next(it)) for _ in range(n2)]
    user_ref = next(it)                                  # [user_num, d_u] VMEM
    lhs_out = next(it)                                   # [B, d1+d2+d_u] bf16

    f32 = jnp.float32
    # emb_layer on the timestep embedding (no activation)
    emb = jnp.dot(t_ref[...], w_emb[...], preferred_element_type=f32) + b_emb[...]

    # chain 1: cat([x, emb]) @ W0  ==  x @ W0[:d_x] + emb @ W0[d_x:]   (no concat)
    w0, b0 = lyr1[0]
    h = (jnp.dot(x_ref[...], w0[pl.ds(0, d_x), :], preferred_element_type=f32)
         + jnp.dot(emb, w0[pl.ds(d_x, d_emb), :], preferred_element_type=f32)
         + b0[...])
    h = jnp.tanh(h)
    for w, b in lyr1[1:]:
        h = jnp.tanh(jnp.dot(h, w[...], preferred_element_type=f32) + b[...])

    # chain 2: cat([x_U, emb]) @ W0'  (same split-matmul trick)
    w0, b0 = lyr2[0]
    hu = (jnp.dot(xu_ref[...], w0[pl.ds(0, d_xu), :], preferred_element_type=f32)
          + jnp.dot(emb, w0[pl.ds(d_xu, d_emb), :], preferred_element_type=f32)
          + b0[...])
    hu = jnp.tanh(hu)
    for w, b in lyr2[1:]:
        hu = jnp.tanh(jnp.dot(hu, w[...], preferred_element_type=f32) + b[...])

    # user-row gather as a one-hot MXU matmul: a single vmatmul instead of B
    # serialized dynamic-slice loads + concat; an out-of-range index simply
    # produces an all-zero row (no unchecked VMEM OOB read).
    batch = idx_ref.shape[0]
    iota = jax.lax.broadcasted_iota(jnp.int32, (batch, user_num), 1)
    onehot = jnp.where(iota == idx_ref[...], 1.0, 0.0).astype(f32)
    u = jnp.dot(onehot, user_ref[...], preferred_element_type=f32)

    # single contiguous lhs [h | hu | u], normalized once (EUP rsqrt, eps-guarded)
    lhs = jnp.concatenate([h, hu, u], axis=1)
    ssq = jnp.sum(lhs * lhs, axis=1, keepdims=True)
    inv_u = jax.lax.rsqrt(jnp.maximum(ssq, eps))
    lhs_out[...] = (lhs * inv_u).astype(lhs_out.dtype)


def fused_mlp_pallas(index, t_emb, x, x_u, params):
    b = x.shape[0]
    w_emb, b_emb = params["emb_layer"]
    l1, l2 = params["in_layers"], params["in_layers2"]
    d_emb = t_emb.shape[1]
    d_x, d_xu = x.shape[1], x_u.shape[1]
    d1 = l1[-1][0].shape[1]
    d2 = l2[-1][0].shape[1]
    user_tbl = params["embedding_user"]
    user_num, d_u = user_tbl.shape
    d_total = d1 + d2 + d_u

    # TODO(synk): at production user counts keep embedding_user in HBM
    # (memory_space=pl.ANY) and DMA-gather only the B indexed rows instead of
    # staging the whole table in VMEM (64 MiB ceiling on v7x).
    inputs = [index.astype(jnp.int32).reshape(b, 1), t_emb, x, x_u,
              w_emb, b_emb.reshape(1, -1)]
    for w, bb in l1:
        inputs += [w, bb.reshape(1, -1)]
    for w, bb in l2:
        inputs += [w, bb.reshape(1, -1)]
    inputs.append(user_tbl)

    in_specs = [pl.BlockSpec(memory_space=pltpu.MemorySpace.VMEM)] * len(inputs)
    return pl.pallas_call(
        functools.partial(_fused_mlp_kernel, n1=len(l1), n2=len(l2),
                          d_x=d_x, d_xu=d_xu, d_emb=d_emb,
                          user_num=user_num, eps=_EPS_SQ),
        out_shape=jax.ShapeDtypeStruct((b, d_total), _LHS_DTYPE),
        in_specs=in_specs,
        out_specs=pl.BlockSpec(memory_space=pltpu.MemorySpace.VMEM),
    )(*inputs)


# ----------------- kernel 2: cosine similarity vs. the item catalog -----------------

def _cosine_kernel(lhs_ref, items_ref, inv_ref, o_ref):
    # lhs was pre-scaled by 1/||u|| in kernel 1 and the per-item inverse norms are
    # a precomputed static parameter -> a single K=d_total MXU dot + a scale.
    dots = jnp.dot(lhs_ref[...], items_ref[...], preferred_element_type=jnp.float32)
    o_ref[...] = dots * inv_ref[...]


def _choose_item_grid(n_items):
    # Lane-dense tile (multiple of 128, capped at 2048 lanes so DMAs are large
    # enough to sit near the HBM roofline) with an EVEN number of grid steps
    # (>=2) whenever the catalog spans more than one 128-lane chunk, so both
    # v7x TensorCores share the "parallel" axis; no-op on v5e/v6e (1 TC).
    n128 = pl.cdiv(n_items, 128)
    if n128 < 2:
        return 128, 1
    chunks = min(16, n128 // 2)          # tile <= 2048 lanes, >= 2 steps
    steps = pl.cdiv(n128, chunks)
    if steps % 2:
        steps += 1                       # pad to an even step count (cheap)
    return chunks * 128, steps


def cosine_vs_items_pallas(lhs, items_t, inv_norm):
    d_total, n_items = items_t.shape
    b = lhs.shape[0]
    assert lhs.shape[1] == d_total

    tile, n_steps = _choose_item_grid(n_items)
    n_pad = tile * n_steps
    if n_pad != n_items:                 # remainder handling: zero-pad the catalog
        items_t = jnp.pad(items_t, ((0, 0), (0, n_pad - n_items)))
        inv_norm = jnp.pad(inv_norm, ((0, 0), (0, n_pad - n_items)))

    # TODO(synk): on v5e/v6e the item stream can be halved again with int8
    # (scale folded into inv_norm); on v7x (no int MXU path) use fp8 e4m3.
    item_bytes = items_t.dtype.itemsize
    cost = pl.CostEstimate(
        flops=2 * b * n_pad * d_total + b * n_pad,
        transcendentals=0,
        bytes_accessed=(d_total * n_pad * item_bytes + n_pad * 4
                        + b * n_pad * 4 + b * d_total * lhs.dtype.itemsize))

    out = pl.pallas_call(
        _cosine_kernel,
        out_shape=jax.ShapeDtypeStruct((b, n_pad), jnp.float32),
        grid=(n_steps,),
        in_specs=[
            pl.BlockSpec((b, d_total), lambda j: (0, 0)),      # resident lhs
            pl.BlockSpec((d_total, tile), lambda j: (0, j)),   # lane-dense item tile
            pl.BlockSpec((1, tile), lambda j: (0, j)),         # precomputed 1/||item||
        ],
        out_specs=pl.BlockSpec((b, tile), lambda j: (0, j)),   # lane-dense output
        compiler_params=pltpu.CompilerParams(
            dimension_semantics=("parallel",)),
        cost_estimate=cost,
    )(lhs, items_t, inv_norm)
    return out if n_pad == n_items else out[:, :n_items]


# ------------------------------ JAX glue ----------------------------------

def timestep_embedding(timesteps, dim, max_period=10000):
    half = dim // 2
    freqs = jnp.exp(-math.log(max_period) * jnp.arange(half, dtype=jnp.float32) / half)
    args = timesteps[:, None].astype(jnp.float32) * freqs[None]
    emb = jnp.concatenate([jnp.cos(args), jnp.sin(args)], axis=-1)
    if dim % 2:
        emb = jnp.concatenate([emb, jnp.zeros_like(emb[:, :1])], axis=-1)
    return emb


def init_params(key, in_dims, emb_size, item_num, user_num):
    in_dims2 = list(in_dims)
    in_dims2[0] *= 2
    in_dims_temp = [in_dims[0] + emb_size] + list(in_dims[1:])
    in_dims_temp2 = [in_dims2[0] + emb_size] + list(in_dims2[1:])
    emb_user_dim = in_dims_temp[-1]
    emb_item_dim = in_dims_temp[-1] + emb_user_dim + in_dims_temp2[-1]

    keys = iter(jax.random.split(key, 64))

    def linear_init(d_in, d_out):
        std = (2.0 / (d_in + d_out)) ** 0.5
        w = std * jax.random.normal(next(keys), (d_in, d_out), jnp.float32)
        b = 0.001 * jax.random.normal(next(keys), (d_out,), jnp.float32)
        return w, b

    params = {}
    params["emb_layer"] = linear_init(emb_size, emb_size)
    params["in_layers"] = [linear_init(di, do)
                           for di, do in zip(in_dims_temp[:-1], in_dims_temp[1:])]
    params["in_layers2"] = [linear_init(di, do)
                            for di, do in zip(in_dims_temp2[:-1], in_dims_temp2[1:])]
    # NOTE: out_layers exist in the PyTorch module but are unused by this forward.
    bound_i = (6.0 / (item_num + emb_item_dim)) ** 0.5
    bound_u = (6.0 / (user_num + emb_user_dim)) ** 0.5
    items_f32 = jax.random.uniform(next(keys), (emb_item_dim, item_num),
                                   jnp.float32, -bound_i, bound_i)
    # Item table stored transposed [emb_item_dim, item_num] in bf16 (the only
    # catalog-scale HBM stream); the per-item inverse norms are precomputed once
    # in f32 from the f32 table -- the parameter is static, so kernel 2 never
    # recomputes norms and the un-normalized bf16 table avoids double rounding.
    params["embedding_item_t"] = items_f32.astype(jnp.bfloat16)
    norms = jnp.sqrt(jnp.sum(items_f32 * items_f32, axis=0, keepdims=True))
    params["item_inv_norm"] = 1.0 / jnp.maximum(norms, _NORM_EPS)  # [1, item_num] f32
    params["embedding_user"] = jax.random.uniform(
        next(keys), (user_num, emb_user_dim), jnp.float32, -bound_u, bound_u)
    return params


def dnn_forward(params, x, timesteps, x_u, index, emb_size):
    # TODO(synk): the LightGCN link-prediction front-end (adjacency_to_edge,
    # gcn.predict_link, pred_to_adjacency, e_f) has no provided definition; x is
    # consumed directly as the dense interaction features, as in the prior version.
    b = x.shape[0]
    x_u = x_u.reshape(b, -1)
    t_emb = timestep_embedding(timesteps, emb_size)
    # dropout(p=0.5) is eval-mode identity; norm=False so no F.normalize on x.
    lhs = fused_mlp_pallas(index, t_emb, x, x_u, params)
    return cosine_vs_items_pallas(lhs, params["embedding_item_t"],
                                  params["item_inv_norm"])


# ------------------------------- driver ------------------------------------

if __name__ == "__main__":
    in_dims = [64, 32]          # in_dims[-1] == out_dims[0]
    emb_size = 16
    item_num = 256
    user_num = 64
    B = 8

    key = jax.random.PRNGKey(0)
    kp, kx, kxu, kt, ki = jax.random.split(key, 5)
    params = init_params(kp, in_dims, emb_size, item_num, user_num)

    x = jax.random.normal(kx, (B, in_dims[0]), jnp.float32)
    x_U = jax.random.normal(kxu, (B, 2, in_dims[0]), jnp.float32)   # reshaped to [B, 2*in]
    timesteps = jax.random.randint(kt, (B,), 0, 1000).astype(jnp.float32)
    index = jax.random.randint(ki, (B,), 0, user_num)

    fwd = jax.jit(functools.partial(dnn_forward, emb_size=emb_size))
    out = fwd(params, x, timesteps, x_U, index)
    jax.block_until_ready(out)
    assert out.shape == (B, item_num)
    assert bool(jnp.all(jnp.isfinite(out)))
    print("KERNEL_OK")
</pallas_src>

<mosaic_0001>
module attributes {stable_mosaic.version = 11 : i64} {
  func.func @_cosine_kernel(%arg0: i32, %arg1: memref<8x96xbf16, #tpu.memory_space<vmem>>, %arg2: memref<96x128xbf16, #tpu.memory_space<vmem>>, %arg3: memref<1x128xf32, #tpu.memory_space<vmem>>, %arg4: memref<8x128xf32, #tpu.memory_space<vmem>>) attributes {dimension_semantics = [#tpu.dimension_semantics<parallel>], iteration_bounds = array<i64: 2>, scalar_prefetch = 0 : i64, scratch_operands = 0 : i64, tpu.core_type = #tpu.core_type<tc>, window_params = [{pipeline_mode = #tpu.pipeline_mode<synchronous>, transform_indices = @transform_0, window_bounds = array<i64: 8, 96>}, {transform_indices = @transform_1, window_bounds = array<i64: 96, 128>}, {transform_indices = @transform_2, window_bounds = array<i64: 1, 128>}, {transform_indices = @transform_3, window_bounds = array<i64: 8, 128>}]} {
    %c0 = arith.constant 0 : index
    %c0_0 = arith.constant 0 : index
    %0 = vector.load %arg1[%c0, %c0_0] : memref<8x96xbf16, #tpu.memory_space<vmem>>, vector<8x96xbf16>
    %c0_1 = arith.constant 0 : index
    %c0_2 = arith.constant 0 : index
    %1 = vector.load %arg2[%c0_1, %c0_2] : memref<96x128xbf16, #tpu.memory_space<vmem>>, vector<96x128xbf16>
    %cst = arith.constant dense<0.000000e+00> : vector<8x128xf32>
    %2 = tpu.matmul %0, %1, %cst {dimension_numbers = #tpu.dot_dimension_numbers<[1], [0], [0], [1], [0, 0, 1, 1], [], []>} : vector<8x96xbf16>, vector<96x128xbf16>, vector<8x128xf32> -> vector<8x128xf32>
    %c0_3 = arith.constant 0 : index
    %c0_4 = arith.constant 0 : index
    %3 = vector.load %arg3[%c0_3, %c0_4] : memref<1x128xf32, #tpu.memory_space<vmem>>, vector<1x128xf32>
    %4 = vector.broadcast %3 : vector<1x128xf32> to vector<8x128xf32>
    %5 = arith.mulf %2, %4 : vector<8x128xf32>
    %c0_5 = arith.constant 0 : index
    %c0_6 = arith.constant 0 : index
    %6 = vector.load %arg4[%c0_5, %c0_6] : memref<8x128xf32, #tpu.memory_space<vmem>>, vector<8x128xf32>
    tpu.vector_store %arg4[%c0_5, %c0_6], %5 {strides = array<i32>} : memref<8x128xf32, #tpu.memory_space<vmem>>, vector<8x128xf32>,
    return
  }
  func.func @transform_0(%arg0: i32) -> (i32, i32) {
    %c0_i32 = arith.constant 0 : i32
    %c0_i32_0 = arith.constant 0 : i32
    %c0_i32_1 = arith.constant 0 : i32
    return %c0_i32, %c0_i32_0 : i32, i32
  }
  func.func @transform_1(%arg0: i32) -> (i32, i32) {
    %c0_i32 = arith.constant 0 : i32
    %c0_i32_0 = arith.constant 0 : i32
    return %c0_i32, %arg0 : i32, i32
  }
  func.func @transform_2(%arg0: i32) -> (i32, i32) {
    %c0_i32 = arith.constant 0 : i32
    %c0_i32_0 = arith.constant 0 : i32
    return %c0_i32, %arg0 : i32, i32
  }
  func.func @transform_3(%arg0: i32) -> (i32, i32) {
    %c0_i32 = arith.constant 0 : i32
    %c0_i32_0 = arith.constant 0 : i32
    return %c0_i32, %arg0 : i32, i32
  }
}

module attributes {stable_mosaic.version = 11 : i64} {
  func.func @_fused_mlp_kernel(%arg0: memref<8x1xi32, #tpu.memory_space<vmem>>, %arg1: memref<8x16xf32, #tpu.memory_space<vmem>>, %arg2: memref<8x64xf32, #tpu.memory_space<vmem>>, %arg3: memref<8x128xf32, #tpu.memory_space<vmem>>, %arg4: memref<16x16xf32, #tpu.memory_space<vmem>>, %arg5: memref<1x16xf32, #tpu.memory_space<vmem>>, %arg6: memref<80x32xf32, #tpu.memory_space<vmem>>, %arg7: memref<1x32xf32, #tpu.memory_space<vmem>>, %arg8: memref<144x32xf32, #tpu.memory_space<vmem>>, %arg9: memref<1x32xf32, #tpu.memory_space<vmem>>, %arg10: memref<64x32xf32, #tpu.memory_space<vmem>>, %arg11: memref<8x96xbf16, #tpu.memory_space<vmem>>) attributes {dimension_semantics = [], scalar_prefetch = 0 : i64, scratch_operands = 0 : i64, tpu.core_type = #tpu.core_type<tc>} {
    %c0 = arith.constant 0 : index
    %c0_0 = arith.constant 0 : index
    %0 = vector.load %arg1[%c0, %c0_0] : memref<8x16xf32, #tpu.memory_space<vmem>>, vector<8x16xf32>
    %c0_1 = arith.constant 0 : index
    %c0_2 = arith.constant 0 : index
    %1 = vector.load %arg4[%c0_1, %c0_2] : memref<16x16xf32, #tpu.memory_space<vmem>>, vector<16x16xf32>
    %cst = arith.constant dense<0.000000e+00> : vector<8x16xf32>
    %2 = tpu.matmul %0, %1, %cst {dimension_numbers = #tpu.dot_dimension_numbers<[1], [0], [0], [1], [0, 0, 1, 1], [], []>} : vector<8x16xf32>, vector<16x16xf32>, vector<8x16xf32> -> vector<8x16xf32>
    %c0_3 = arith.constant 0 : index
    %c0_4 = arith.constant 0 : index
    %3 = vector.load %arg5[%c0_3, %c0_4] : memref<1x16xf32, #tpu.memory_space<vmem>>, vector<1x16xf32>
    %4 = vector.broadcast %3 : vector<1x16xf32> to vector<8x16xf32>
    %5 = arith.addf %2, %4 : vector<8x16xf32>
    %c0_5 = arith.constant 0 : index
    %c0_6 = arith.constant 0 : index
    %6 = vector.load %arg2[%c0_5, %c0_6] : memref<8x64xf32, #tpu.memory_space<vmem>>, vector<8x64xf32>
    %c0_7 = arith.constant 0 : index
    %c0_8 = arith.constant 0 : index
    %7 = vector.load %arg6[%c0_7, %c0_8] : memref<80x32xf32, #tpu.memory_space<vmem>>, vector<64x32xf32>
    %cst_9 = arith.constant dense<0.000000e+00> : vector<8x32xf32>
    %8 = tpu.matmul %6, %7, %cst_9 {dimension_numbers = #tpu.dot_dimension_numbers<[1], [0], [0], [1], [0, 0, 1, 1], [], []>} : vector<8x64xf32>, vector<64x32xf32>, vector<8x32xf32> -> vector<8x32xf32>
    %c64 = arith.constant 64 : index
    %c0_10 = arith.constant 0 : index
    %9 = vector.load %arg6[%c64, %c0_10] : memref<80x32xf32, #tpu.memory_space<vmem>>, vector<16x32xf32>
    %cst_11 = arith.constant dense<0.000000e+00> : vector<8x32xf32>
    %10 = tpu.matmul %5, %9, %cst_11 {dimension_numbers = #tpu.dot_dimension_numbers<[1], [0], [0], [1], [0, 0, 1, 1], [], []>} : vector<8x16xf32>, vector<16x32xf32>, vector<8x32xf32> -> vector<8x32xf32>
    %11 = arith.addf %8, %10 : vector<8x32xf32>
    %c0_12 = arith.constant 0 : index
    %c0_13 = arith.constant 0 : index
    %12 = vector.load %arg7[%c0_12, %c0_13] : memref<1x32xf32, #tpu.memory_space<vmem>>, vector<1x32xf32>
    %13 = vector.broadcast %12 : vector<1x32xf32> to vector<8x32xf32>
    %14 = arith.addf %11, %13 : vector<8x32xf32>
    %15 = math.tanh %14 : vector<8x32xf32>
    %c0_14 = arith.constant 0 : index
    %c0_15 = arith.constant 0 : index
    %16 = vector.load %arg3[%c0_14, %c0_15] : memref<8x128xf32, #tpu.memory_space<vmem>>, vector<8x128xf32>
    %c0_16 = arith.constant 0 : index
    %c0_17 = arith.constant 0 : index
    %17 = vector.load %arg8[%c0_16, %c0_17] : memref<144x32xf32, #tpu.memory_space<vmem>>, vector<128x32xf32>
    %cst_18 = arith.constant dense<0.000000e+00> : vector<8x32xf32>
    %18 = tpu.matmul %16, %17, %cst_18 {dimension_numbers = #tpu.dot_dimension_numbers<[1], [0], [0], [1], [0, 0, 1, 1], [], []>} : vector<8x128xf32>, vector<128x32xf32>, vector<8x32xf32> -> vector<8x32xf32>
    %c128 = arith.constant 128 : index
    %c0_19 = arith.constant 0 : index
    %19 = vector.load %arg8[%c128, %c0_19] : memref<144x32xf32, #tpu.memory_space<vmem>>, vector<16x32xf32>
    %cst_20 = arith.constant dense<0.000000e+00> : vector<8x32xf32>
    %20 = tpu.matmul %5, %19, %cst_20 {dimension_numbers = #tpu.dot_dimension_numbers<[1], [0], [0], [1], [0, 0, 1, 1], [], []>} : vector<8x16xf32>, vector<16x32xf32>, vector<8x32xf32> -> vector<8x32xf32>
    %21 = arith.addf %18, %20 : vector<8x32xf32>
    %c0_21 = arith.constant 0 : index
    %c0_22 = arith.constant 0 : index
    %22 = vector.load %arg9[%c0_21, %c0_22] : memref<1x32xf32, #tpu.memory_space<vmem>>, vector<1x32xf32>
    %23 = vector.broadcast %22 : vector<1x32xf32> to vector<8x32xf32>
    %24 = arith.addf %21, %23 : vector<8x32xf32>
    %25 = math.tanh %24 : vector<8x32xf32>
    %26 = tpu.iota {dimensions = array<i32: 1>} : vector<8x64xi32>
    %c0_23 = arith.constant 0 : index
    %c0_24 = arith.constant 0 : index
    %27 = vector.load %arg0[%c0_23, %c0_24] : memref<8x1xi32, #tpu.memory_space<vmem>>, vector<8x1xi32>
    %28 = vector.broadcast %27 : vector<8x1xi32> to vector<8x64xi32>
    %29 = arith.cmpi eq, %26, %28 : vector<8x64xi32>
    %cst_25 = arith.constant 1.000000e+00 : f32
    %cst_26 = arith.constant 0.000000e+00 : f32
    %30 = vector.broadcast %cst_25 : f32 to vector<8x64xf32>
    %31 = vector.broadcast %cst_26 : f32 to vector<8x64xf32>
    %32 = arith.select %29, %30, %31 : vector<8x64xi1>, vector<8x64xf32>
    %c0_27 = arith.constant 0 : index
    %c0_28 = arith.constant 0 : index
    %33 = vector.load %arg10[%c0_27, %c0_28] : memref<64x32xf32, #tpu.memory_space<vmem>>, vector<64x32xf32>
    %cst_29 = arith.constant dense<0.000000e+00> : vector<8x32xf32>
    %34 = tpu.matmul %32, %33, %cst_29 {dimension_numbers = #tpu.dot_dimension_numbers<[1], [0], [0], [1], [0, 0, 1, 1], [], []>} : vector<8x64xf32>, vector<64x32xf32>, vector<8x32xf32> -> vector<8x32xf32>
    %35 = tpu.concatenate %15, %25, %34 in 1 : vector<8x32xf32>, vector<8x32xf32>, vector<8x32xf32> -> vector<8x96xf32>
    %36 = arith.mulf %35, %35 : vector<8x96xf32>
    %cst_30 = arith.constant dense<0.000000e+00> : vector<8xf32>
    %37 = vector.multi_reduction <add>, %36, %cst_30 [1] : vector<8x96xf32> to vector<8xf32>
    %38 = vector.shape_cast %37 : vector<8xf32> to vector<8x1xf32>
    %cst_31 = arith.constant 1.000000e-16 : f32
    %39 = vector.broadcast %cst_31 : f32 to vector<8x1xf32>
    %40 = arith.maximumf %38, %39 : vector<8x1xf32>
    %41 = math.rsqrt %40 : vector<8x1xf32>
    %42 = vector.broadcast %41 : vector<8x1xf32> to vector<8x96xf32>
    %43 = arith.mulf %35, %42 : vector<8x96xf32>
    %44 = arith.truncf %43 : vector<8x96xf32> to vector<8x96xbf16>
    %c0_32 = arith.constant 0 : index
    %c0_33 = arith.constant 0 : index
    %45 = vector.load %arg11[%c0_32, %c0_33] : memref<8x96xbf16, #tpu.memory_space<vmem>>, vector<8x96xbf16>
    tpu.vector_store %arg11[%c0_32, %c0_33], %44 {strides = array<i32>} : memref<8x96xbf16, #tpu.memory_space<vmem>>, vector<8x96xbf16>,
    return
  }
}

</mosaic_0001>

<bundles_post_ra>
// kernel: dnn_forward.3
= control target key start
LH: loop header
LB: loop body
LE: loop exit
PB: predicated region body
PF: predicated region fallthrough
CT: control target
= control target key end

     0   :  { %8 = vsyncpa [#allocation4], 0  ;;  %s754_s0 = inlined_call_operand.vmem [shape: bf16[8,96], index: 0, kind: input, shape index: {}]   ;;  %s755_s1 = inlined_call_operand.vmem [shape: bf16[96,256], index: 1, kind: input, shape index: {}]   ;;  %s756_s2 = inlined_call_operand.vmem [shape: f32[1,256], index: 2, kind: input, shape index: {}]   ;;  %s757_s3 = inlined_call_operand.hbm [shape: f32[8,256], index: 3, kind: output, shape index: {}]  }
   0x1   :  { %10 = vsyncpa [#allocation4 + $0x1], 0  ;;  %s636_s12 = smov 0   ;;  %s638_s13 = smov 0  }
   0x2   :  { %s640_s14 = smov 0   ;;  %s642_s15 = smov 0  }
   0x3 LB: > { %s657_s16 = sadd.s32 4294967295, %s611_s15   ;;  %s459_s17 = sadd.s32 4294967294, %s611_s15   ;;  %s611_s15 = sphi %s642_s15, %s763_s15   ;;  %s607_s14 = sphi %s640_s14, %s762_s14   ;;  %s603_s13 = sphi %s638_s13, %s761_s13   ;;  %s599_s12 = sphi %s636_s12, %s760_s12  }
   0x4   : > { %s661_s18 = sadd.s32 1, %s611_s15   ;;  %s44_s19 = sadd.s32 1, %s607_s14 }
   0x5   : > { %s41_s20 = ssub.s32 %s611_s15, %s661_s18  ;;  %p51_p0 = scmp.ne.s32.totalorder %s607_s14, %s603_s13 }
   0x6   : > { %p42_p1 = scmp.eq.s32.totalorder %s41_s20, 0  ;;  %p52_p2 = scmp.eq.s32.totalorder %s611_s15, 0 }
   0x7   : > { %p107_p3 = scmp.eq.s32.totalorder %s657_s16, 1  ;;  %p112_p4 = scmp.ne.s32.totalorder %s603_s13, %s599_s12 }
   0x8   : > { %s673_s21 = scalar_select %p42_p1, %s607_s14, %s44_s19  }
   0x9   : > { %p53_p5 = por %p52_p2, %p51_p0  ;;  %p675_p6 = por %p107_p3, %p51_p0 }
   0xa   : > { %p113_p7 = scmp.eq.s32.totalorder %s459_s17, 1  ;;  %p461_p9 = scmp.ge.s32.totalorder %s611_s15, 2 }
   0xc   : > { %p679_p8 = por %p113_p7, %p112_p4  ;;  %132 = sbr.rel (%p461_p9) target bundleno = 31 (0x1f), region = 20 }
  0x13   : > { %135 = sbr.rel (!%p53_p5) target bundleno = 31 (0x1f), region = 24  ;;  %s137_s24 = sand.u32 (%p53_p5), 1, %s607_s14  }
  0x14   : > { %s462_s25 = sshll.u32 (%p53_p5), %s611_s15, 2  ;;  %s500_s26 = smul.u32 (%p53_p5), 48, %s137_s24 }
  0x15   : > { %s141_s29 = scalar_lea.vmem (%p53_p5), %s755_s1, %s462_s25 }
  0x16   : > { %v157_v0 = vld [vmem:[%s141_s29] sm:$0xf] (%p53_p5)  ;;  %v159_v1 = vld [vmem:[%s141_s29 + $0x8] sm:$0xf] (%p53_p5)  ;;  %v161_v2 = vld [vmem:[%s141_s29 + $0x10] sm:$0xf] (%p53_p5) }
  0x17   : > { %v163_v3 = vld [vmem:[%s141_s29 + $0x18] sm:$0xf] (%p53_p5)  ;;  %v165_v4 = vld [vmem:[%s141_s29 + $0x20] sm:$0xf] (%p53_p5)  ;;  %s139_s30 = scalar_lea.vmem (%p53_p5), [#allocation2], %s500_s26 }
  0x18   : > { %158 = vst [vmem:[%s139_s30] sm:$0xf] (%p53_p5), %v157_v0  ;;  %160 = vst [vmem:[%s139_s30 + $0x4] sm:$0xf] (%p53_p5), %v159_v1  ;;  %v167_v5 = vld [vmem:[%s141_s29 + $0x28] sm:$0xf] (%p53_p5) }
  0x19   : > { %162 = vst [vmem:[%s139_s30 + $0x8] sm:$0xf] (%p53_p5), %v161_v2  ;;  %164 = vst [vmem:[%s139_s30 + $0xc] sm:$0xf] (%p53_p5), %v163_v3  ;;  %v169_v6 = vld [vmem:[%s141_s29 + $0x30] sm:$0xf] (%p53_p5) }
  0x1a   : > { %166 = vst [vmem:[%s139_s30 + $0x10] sm:$0xf] %v165_v4  ;;  %v171_v7 = vld [vmem:[%s141_s29 + $0x38] sm:$0xf]  ;;  %168 = vst [vmem:[%s139_s30 + $0x14] sm:$0xf] %v167_v5 }
  0x1b   : > { %170 = vst [vmem:[%s139_s30 + $0x18] sm:$0xf] %v169_v6  ;;  %172 = vst [vmem:[%s139_s30 + $0x1c] sm:$0xf] %v171_v7  ;;  %v173_v8 = vld [vmem:[%s141_s29 + $0x40] sm:$0xf] }
  0x1c   : > { %v175_v9 = vld [vmem:[%s141_s29 + $0x48] sm:$0xf]  ;;  %v177_v10 = vld [vmem:[%s141_s29 + $0x50] sm:$0xf]  ;;  %174 = vst [vmem:[%s139_s30 + $0x20] sm:$0xf] %v173_v8 }
  0x1d   : > { %176 = vst [vmem:[%s139_s30 + $0x24] sm:$0xf] %v175_v9  ;;  %178 = vst [vmem:[%s139_s30 + $0x28] sm:$0xf] %v177_v10  ;;  %v179_v11 = vld [vmem:[%s141_s29 + $0x58] sm:$0xf] }
  0x1e   : > { %180 = vst [vmem:[%s139_s30 + $0x2c] sm:$0xf] %v179_v11 }
  0x1f PF: > { %p463_p10 = scmp.ge.s32.totalorder %s611_s15, 1  ;;  %p232_p11 = scmp.lt.s32.totalorder %s611_s15, 3 }
  0x21   : > { %p233_p12 = pnand %p463_p10, %p232_p11 }
  0x22   : > { %s694_s4 = sand.u32 (!%p233_p12), 1, %s603_s13   ;;  %v613_v12 = vmov (!%p233_p12), 0.0   ;;  %vm614_vm0 = vmmov (!%p233_p12), 0   ;;  %v269_v19 = vld [vmem:[%s754_s0] sm:$0xf] (!%p233_p12)  ;;  %vm318_vm1 = vcmask (!%p233_p12), 785408  }
  0x23   : > { %236 = sbr.rel (%p233_p12) target bundleno = 291 (0x123), region = 69  ;;  %484 = vmatprep.subr.bf16.mxu0 (!%p233_p12), %v613_v12  ;;  %496 = vmatprep.mubr.msk.bf16.mxu0 (!%p233_p12), %vm614_vm0, %v613_v12  ;;  %p265_p13 = scmp.lt.s32.totalorder (!%p233_p12), %s657_s16, 1 }
  0x24   : > { %s501_s5 = smul.u32 (!%p233_p12), 48, %s694_s4  ;;  %s464_s10 = sshll.u32 (!%p233_p12), %s694_s4, 3 }
  0x25   : > { %s474_s20 = sshll.u32 (!%p233_p12), %s657_s16, 7  ;;  %s264_s24 = scalar_lea.vmem (!%p233_p12), [#allocation3], %s464_s10 }
  0x26   : > { %s241_s6 = scalar_lea.vmem (!%p233_p12), [#allocation2], %s501_s5  ;;  %s385_s25 = sshll.u32 (!%p233_p12), %s264_s24, 4  ;;  %s712_s25 = int_to_ptr.vmem [resolvable:$true] %s385_s25 }
  0x27   : > { %v543_v13 = vld [vmem:[%s241_s6] sm:$0xff] (!%p233_p12)   ;;  %v544_v14 = vld [vmem:[%s241_s6 + $0x8] sm:$0xff] (!%p233_p12)   ;;  %v545_v15 = vld [vmem:[%s241_s6 + $0x10] sm:$0xff] (!%p233_p12)   ;;  %s710_s28 = scalar_lea.hbm (!%p233_p12), %s757_s3, %s474_s20  ;;  %s372_s29 = scalar_lea.sflag (!%p233_p12), [#allocation4], %s694_s4 }
  0x28   : > { %485 = vmatpush3.bf16.msra.mxu0 (!%p233_p12), %v543_v13  ;;  %v546_v16 = vld [vmem:[%s241_s6 + $0x18] sm:$0xff] (!%p233_p12)   ;;  %v547_v17 = vld [vmem:[%s241_s6 + $0x20] sm:$0xff] (!%p233_p12)   ;;  %v548_v18 = vld [vmem:[%s241_s6 + $0x28] sm:$0xff] (!%p233_p12)   ;;  %s615_s30 = smov (!%p233_p12), [#allocation3]  }
  0x29   : > { %486 = vmatprep.subr.bf16.mxu0 (!%p233_p12), %v613_v12  ;;  %s553_s5 = sshll.u32 (!%p233_p12), %s615_s30, 4  ;;  %s554_s5 = int_to_ptr.vmem [resolvable:$false] %s553_s5 }
  0x2a   : > { %s266_s9 = scalar_select %p265_p13, %s657_s16, 1 }
  0x2b   : > { %s549_s16 = scalar_lea.vmem %s712_s25, 128  ;;  %s555_s6 = scalar_lea.vmem %s554_s5, 256 }
  0x2c   : > { %487 = vmatpush3.bf16.msra.mxu0 %v544_v14  ;;  %s267_s19 = scalar_lea.vmem %s756_s2, %s266_s9  ;;  %p550_p0 = scmp.ne.s32.totalorder %s712_s25, %s549_s16 }
  0x2d   : > { %488 = vmatprep.subr.bf16.mxu0 %v613_v12  ;;  %v472_v20 = vld [vmem:[%s267_s19] ss:$0 sm:$0xff]  ;;  %p556_p3 = scmp.lt.s32.totalorder %s712_s25, %s554_s5  ;;  %p557_p4 = scmp.lt.s32.totalorder %s555_s6, %s549_s16 }
  0x2e   : > { %p551_p1 = pnand %p550_p0, %p675_p6 }
  0x2f   : > { %p558_p5 = por %p557_p4, %p556_p3 }
  0x30   : > { %489 = vmatpush3.bf16.msra.mxu0 %v545_v15  ;;  %p552_p2 = pneg %p551_p1 }
  0x31   : > { %490 = vmatprep.subr.bf16.mxu0 %v613_v12 }
  0x32   : > { %p559_p7 = pnand %p558_p5, %p552_p2 }
  0x34   : > { %491 = vmatpush3.bf16.msra.mxu0 %v546_v16 }
  0x35   : > { %492 = vmatprep.subr.bf16.mxu0 %v613_v12 }
  0x38   : > { %493 = vmatpush3.bf16.msra.mxu0 %v547_v17 }
  0x39   : > { %494 = vmatprep.subr.bf16.mxu0 %v613_v12 }
  0x3c   : > { %495 = vmatpush3.bf16.msra.mxu0 %v548_v18 }
  0x3f   : > { %497 = vmatmul.mubr.msk.bf16.vlgmr.msra.gmra.mrb[0].mxu0 %vm318_vm1, %v269_v19 }
 0x112   : > { %v356_v21 = vpop.f32.mrb[0].mxu0 }
 0x113   : > { %v369_v22 = vmul.f32 %v472_v20, %v356_v21  ;;  %v498_v23 = vpop.f32.mrb[1].mxu0 }
 0x114   : > { %v359_v24 = vpop.f32.mrb[2].mxu0 }
 0x115   : > { %370 = vst [vmem:[%s264_s24] sm:$0xff] %v369_v22  ;;  %v499_v25 = vpop.f32.mrb[3].mxu0 }
 0x116   : > { %562 = shalt.err (!%p559_p7)
}
 0x117   : > { %s563_s4 = scalar_lea.hbm %s710_s28, 128  ;;  %s567_s9 = scalar_lea.hbm %s757_s3, 256 }
 0x118   : > { %p564_p10 = scmp.ne.s32.totalorder %s710_s28, %s563_s4  ;;  %p568_p13 = scmp.lt.u32.totalorder %s710_s28, %s757_s3 }
 0x119   : > { %p569_p0 = scmp.lt.u32.totalorder %s567_s9, %s563_s4  ;;  %p571_p2 = scmp.lt.u32.totalorder %s563_s4, %s710_s28 }
 0x11a   : > { %p565_p11 = pnand %p564_p10, %p675_p6 }
 0x11b   : > { %p570_p1 = por %p569_p0, %p568_p13 }
 0x11c   : > { %p566_p12 = pneg %p565_p11 }
 0x11d   : > { %p572_p3 = por %p571_p2, %p570_p1 }
 0x11f   : > { %p573_p4 = pnand %p572_p3, %p566_p12 }
 0x121   : > { %576 = shalt.err (!%p573_p4)
}
 0x122   : > { %502 = dma.vmem_to_hbm [thread:$0]  (%p675_p6), %s712_s25, 128, %s710_s28, %s372_s29  }
 0x123 PF: > { %s397_s17 = sand.u32 1, %s599_s12   ;;  %p505_p5 = pnand %p461_p9, %p679_p8 }
 0x124   : > { %s398_s19 = scalar_lea.sflag [#allocation4], %s397_s17 }
 0x125   : > { %594 = dma.done.wait (!%p505_p5), %s398_s19, 128  }
 0x126   : > { %596 = vsyncadd (!%p505_p5), %s398_s19, 4294967168  ;;  %p13_p7 = scmp.ge.s32.totalorder %s661_s18, 4   ;;  %s760_s12 = smov %s603_s13 }
 0x127   : > { %s761_s13 = smov %s607_s14  ;;  %s762_s14 = smov %s673_s21 }
 0x128   : > { %s763_s15 = smov %s661_s18  ;;  %15 = sbr.rel (!%p13_p7) target bundleno = 3 (0x3), region = 116 }
 0x12f   :  { %403 = vsyncpa [#allocation4], 1 }
 0x130   :  { %405 = vsyncpa [#allocation4 + $0x1], 1 }

// kernel: dnn_forward.2
= control target key start
LH: loop header
LB: loop body
LE: loop exit
PB: predicated region body
PF: predicated region fallthrough
CT: control target
= control target key end

     0   :  { %v788_v0 = vmov 0.0|0.0   ;;  %vm789_vm0 = vmmov 0   ;;  %v790_v3 = vmov 0.0   ;;  %v791_v5 = vmov 0   ;;  %s792_s27 = smov 64   ;;  %s1030_s4 = inlined_call_operand.vmem [shape: f32[16,16], index: 4, kind: input, shape index: {}]   ;;  %s1031_s0 = inlined_call_operand.vmem [shape: s32[8,1], index: 0, kind: input, shape index: {}]   ;;  %s1032_s6 = inlined_call_operand.vmem [shape: f32[80,32], index: 6, kind: input, shape index: {}]   ;;  %s1033_s1 = inlined_call_operand.vmem [shape: f32[8,16], index: 1, kind: input, shape index: {}]   ;;  %s1034_s2 = inlined_call_operand.vmem [shape: f32[8,64], index: 2, kind: input, shape index: {}]   ;;  %s1035_s10 = inlined_call_operand.vmem [shape: f32[64,32], index: 10, kind: input, shape index: {}]   ;;  %s1036_s8 = inlined_call_operand.vmem [shape: f32[144,32], index: 8, kind: input, shape index: {}]   ;;  %s1037_s5 = inlined_call_operand.vmem [shape: f32[1,16], index: 5, kind: input, shape index: {}]   ;;  %s1038_s3 = inlined_call_operand.vmem [shape: f32[8,128], index: 3, kind: input, shape index: {}]   ;;  %s1039_s9 = inlined_call_operand.vmem [shape: f32[1,32], index: 9, kind: input, shape index: {}]   ;;  %s1040_s7 = inlined_call_operand.vmem [shape: f32[1,32], index: 7, kind: input, shape index: {}]   ;;  %s1041_s11 = inlined_call_operand.vmem [shape: bf16[8,96], index: 11, kind: output, shape index: {}]  }
   0x1   :  { %718 = vmatprep.subr.bf16.mxu0 %v788_v0  ;;  %v39_v1 = vld [vmem:[%s1030_s4] sm:$0xff]  ;;  %v40_v2 = vld [vmem:[%s1030_s4 + $0x8] sm:$0xff]  ;;  %628 = vmatprep.mubr.msk.f32.mxu0 %vm789_vm0, %v790_v3  ;;  %vm48_vm1 = vcmask 130048   ;;  %v125_v13 = vld [vmem:[%s1032_s6 + $0x10] sm:$0xff]  ;;  %vm206_vm2 = vcmask 523264   ;;  %v457_v32 = vlaneseq  ;;  %vm554_vm4 = vcmask 261120  }
   0x2   :  { %v719_v4 = vpack.c.bf16 %v40_v2, %v39_v1  ;;  %781 = vset.pattern.permute.xlu0 %v791_v5  ;;  %v459_v6 = vld [vmem:[%s1031_s0] sm:$0xff]  ;;  %v124_v8 = vld [vmem:[%s1032_s6 + $0x8] sm:$0xff]  ;;  %721 = vmatprep.subr.bf16.mxu1 %v788_v0  ;;  %v126_v14 = vld [vmem:[%s1032_s6 + $0x18] sm:$0xff]  ;;  %vm558_vm5 = vcmask 785408   ;;  %vm566_vm6 = vcmask 781312  }
   0x3   :  { %v123_v7 = vld [vmem:[%s1032_s6] sm:$0xff]  ;;  %461 = vperm.xlu0 %781, %v459_v6   ;;  %635 = vmatprep.mubr.msk.f32.mxu1 %vm789_vm0, %v790_v3  ;;  %v132_v12 = vld [vmem:[%s1032_s6 + $0x48] sm:$0xff]  ;;  %v728_v16 = vpack.c.bf16 %v126_v14, %v125_v13  ;;  %v129_v20 = vld [vmem:[%s1032_s6 + $0x30] sm:$0xff]  ;;  %v458_v36 = vand.u32 127, %v457_v32 }
   0x4   :  { %720 = vmatpush3.bf16.msra.mxu0 %v719_v4  ;;  %v38_v9 = vld [vmem:[%s1033_s1] sm:$0xff]  ;;  %v725_v10 = vpack.c.bf16 %v124_v8, %v123_v7  ;;  %v128_v18 = vld [vmem:[%s1032_s6 + $0x28] sm:$0xff]  ;;  %v130_v21 = vld [vmem:[%s1032_s6 + $0x38] sm:$0xff] }
   0x5   :  { %v131_v11 = vld [vmem:[%s1032_s6 + $0x40] sm:$0xff]  ;;  %724 = vmatprep.subr.bf16.mxu0 %v788_v0  ;;  %v734_v22 = vpack.c.bf16 %v130_v21, %v129_v20  ;;  %v466_v25 = vld [vmem:[%s1035_s10 + $0x8] sm:$0xff]  ;;  %v467_v27 = vld [vmem:[%s1035_s10 + $0x10] sm:$0xff] }
   0x6   :  { %v722_v15 = vpack.c.bf16 %v132_v12, %v131_v11  ;;  %v127_v17 = vld [vmem:[%s1032_s6 + $0x20] sm:$0xff]  ;;  %v468_v28 = vld [vmem:[%s1035_s10 + $0x18] sm:$0xff]  ;;  %v470_v31 = vld [vmem:[%s1035_s10 + $0x28] sm:$0xff] }
   0x7   :  { %629 = vmatmul.mubr.msk.f32.vlgmr.msra.gmra.mrb[0].mxu0 %vm48_vm1, %v38_v9  ;;  %v731_v19 = vpack.c.bf16 %v128_v18, %v127_v17  ;;  %v122_v23 = vld [vmem:[%s1034_s2] sm:$0xff]  ;;  %v767_v29 = vpack.c.bf16 %v468_v28, %v467_v27  ;;  %v471_v34 = vld [vmem:[%s1035_s10 + $0x30] sm:$0xff]  ;;  %v472_v35 = vld [vmem:[%s1035_s10 + $0x38] sm:$0xff] }
   0x8   :  { %723 = vmatpush3.bf16.msra.mxu1 %v722_v15  ;;  %726 = vmatpush3.bf16.msra.mxu0 %v725_v10  ;;  %v465_v24 = vld [vmem:[%s1035_s10] sm:$0xff]  ;;  %v773_v38 = vpack.c.bf16 %v472_v35, %v471_v34  ;;  %v307_v41 = vld [vmem:[%s1036_s8 + $0x88] sm:$0xff]  ;;  %v292_v50 = vld [vmem:[%s1036_s8 + $0x10] sm:$0xff] }
   0x9   :  { %654 = vmatprep.mubr.msk.f32.mxu0 %vm789_vm0, %v790_v3  ;;  %727 = vmatprep.subr.bf16.mxu0 %v788_v0  ;;  %v764_v26 = vpack.c.bf16 %v466_v25, %v465_v24  ;;  %v469_v30 = vld [vmem:[%s1035_s10 + $0x20] sm:$0xff]  ;;  %v291_v48 = vld [vmem:[%s1036_s8 + $0x8] sm:$0xff]  ;;  %v293_v51 = vld [vmem:[%s1036_s8 + $0x18] sm:$0xff] }
   0xa   :  { %736 = vmatprep.subr.bf16.mxu1 %v788_v0  ;;  %v770_v33 = vpack.c.bf16 %v470_v31, %v469_v30  ;;  %v306_v40 = vld [vmem:[%s1036_s8 + $0x80] sm:$0xff]  ;;  %v743_v52 = vpack.c.bf16 %v293_v51, %v292_v50  ;;  %v295_v54 = vld [vmem:[%s1036_s8 + $0x28] sm:$0xff]  ;;  %v296_v56 = vld [vmem:[%s1036_s8 + $0x30] sm:$0xff] }
   0xb   :  { %v572_v42 = vld [vmem:[%s1037_s5] ss:$0 sm:$0xff]  ;;  %v737_v44 = vpack.c.bf16 %v307_v41, %v306_v40  ;;  %v297_v57 = vld [vmem:[%s1036_s8 + $0x38] sm:$0xff]  ;;  %v299_v60 = vld [vmem:[%s1036_s8 + $0x48] sm:$0xff] }
   0xc   :  { %729 = vmatpush3.bf16.msra.mxu0 %v728_v16  ;;  %v290_v47 = vld [vmem:[%s1036_s8] sm:$0xff]  ;;  %v749_v58 = vpack.c.bf16 %v297_v57, %v296_v56  ;;  %v300_v62 = vld [vmem:[%s1036_s8 + $0x50] sm:$0xff]  ;;  %v301_v63 = vld [vmem:[%s1036_s8 + $0x58] sm:$0xff] }
   0xd   :  { %730 = vmatprep.subr.bf16.mxu0 %v788_v0  ;;  %v740_v49 = vpack.c.bf16 %v291_v48, %v290_v47  ;;  %v294_v53 = vld [vmem:[%s1036_s8 + $0x20] sm:$0xff]  ;;  %v755_v1 = vpack.c.bf16 %v301_v63, %v300_v62  ;;  %v304_v5 = vld [vmem:[%s1036_s8 + $0x70] sm:$0xff]  ;;  %v305_v6 = vld [vmem:[%s1036_s8 + $0x78] sm:$0xff] }
   0xe   :  { %v746_v55 = vpack.c.bf16 %v295_v54, %v294_v53  ;;  %v298_v59 = vld [vmem:[%s1036_s8 + $0x40] sm:$0xff]  ;;  %v761_v7 = vpack.c.bf16 %v305_v6, %v304_v5 }
   0xf   :  { %v752_v61 = vpack.c.bf16 %v299_v60, %v298_v59  ;;  %v302_v2 = vld [vmem:[%s1036_s8 + $0x60] sm:$0xff] }
  0x10   :  { %732 = vmatpush3.bf16.msra.mxu0 %v731_v19  ;;  %v289_v8 = vld [vmem:[%s1038_s3] sm:$0xff]  ;;  %s793_s3 = smov 32  }
  0x11   :  { %733 = vmatprep.subr.bf16.mxu0 %v788_v0 }
  0x14   :  { %735 = vmatpush3.bf16.msra.mxu0 %v734_v22 }
  0x15   :  { %763 = vmatprep.subr.bf16.mxu0 %v788_v0 }
  0x17   :  { %655 = vmatmul.mubr.msk.f32.vlgmr.msra.gmra.mrb[2].mxu0 %vm206_vm2, %v122_v23  ;;  %v576_v23 = vld [vmem:[%s1040_s7] ss:$0 sm:$0xff] }
  0x18   :  { %715 = vmatprep.mubr.msk.f32.mxu0 %vm789_vm0, %v790_v3  ;;  %765 = vmatpush3.bf16.msra.mxu0 %v764_v26 }
  0x19   :  { %766 = vmatprep.subr.bf16.mxu0 %v788_v0 }
  0x1c   :  { %768 = vmatpush3.bf16.msra.mxu0 %v767_v29 }
  0x1d   :  { %769 = vmatprep.subr.bf16.mxu0 %v788_v0 }
  0x20   :  { %771 = vmatpush3.bf16.msra.mxu0 %v770_v33 }
  0x21   :  { %772 = vmatprep.subr.bf16.mxu0 %v788_v0 }
  0x24   :  { %774 = vmatpush3.bf16.msra.mxu0 %v773_v38 }
  0x82   :  { %v462_v37 = vpop.permute.xlu0 %461 }
  0x83   :  { %vm463_vm3 = vcmp.eq.s32.totalorder %v458_v36, %v462_v37 }
  0x84   :  { %v464_v39 = vsel %vm463_vm3, 1.0, %v790_v3 }
  0x85   :  { %716 = vmatmul.mubr.msk.f32.vlgmr.msra.gmra.mrb[4].mxu0 %vm206_vm2, %v464_v39 }
  0xda   :  { %v118_v43 = vpop.f32.mrb[0].mxu0 }
  0xdb   :  { %v119_v45 = vadd.f32 %v572_v42, %v118_v43  ;;  %v630_v46 = vpop.f32.mrb[1].mxu0 }
  0xdd   :  { %636 = vmatmul.mubr.msk.f32.vlgmr.msra.gmra.mrb[0].mxu1 %vm48_vm1, %v119_v45 }
  0xde   :  { %738 = vmatpush3.bf16.msra.mxu1 %v737_v44  ;;  %661 = vmatprep.mubr.msk.f32.mxu1 %vm789_vm0, %v790_v3 }
  0xdf   :  { %739 = vmatprep.subr.bf16.mxu1 %v788_v0 }
  0xe1   :  { %662 = vmatmul.mubr.msk.f32.vlgmr.msra.gmra.mrb[2].mxu1 %vm48_vm1, %v119_v45 }
  0xe2   :  { %741 = vmatpush3.bf16.msra.mxu1 %v740_v49  ;;  %696 = vmatprep.mubr.msk.f32.mxu1 %vm789_vm0, %v790_v3  ;;  %v303_v3 = vld [vmem:[%s1036_s8 + $0x68] sm:$0xff] }
  0xe3   :  { %742 = vmatprep.subr.bf16.mxu1 %v788_v0  ;;  %v758_v4 = vpack.c.bf16 %v303_v3, %v302_v2 }
  0xe6   :  { %744 = vmatpush3.bf16.msra.mxu1 %v743_v52 }
  0xe7   :  { %745 = vmatprep.subr.bf16.mxu1 %v788_v0 }
  0xea   :  { %747 = vmatpush3.bf16.msra.mxu1 %v746_v55  ;;  %v276_v9 = vpop.f32.mrb[2].mxu0 }
  0xeb   :  { %748 = vmatprep.subr.bf16.mxu1 %v788_v0  ;;  %v656_v10 = vpop.f32.mrb[3].mxu0 }
  0xee   :  { %750 = vmatpush3.bf16.msra.mxu1 %v749_v58 }
  0xef   :  { %751 = vmatprep.subr.bf16.mxu1 %v788_v0 }
  0xf2   :  { %753 = vmatpush3.bf16.msra.mxu1 %v752_v61 }
  0xf3   :  { %754 = vmatprep.subr.bf16.mxu1 %v788_v0 }
  0xf6   :  { %756 = vmatpush3.bf16.msra.mxu1 %v755_v1 }
  0xf7   :  { %757 = vmatprep.subr.bf16.mxu1 %v788_v0 }
  0xfa   :  { %759 = vmatpush3.bf16.msra.mxu1 %v758_v4 }
  0xfb   :  { %760 = vmatprep.subr.bf16.mxu1 %v788_v0  ;;  %v578_v0 = vld [vmem:[%s1039_s9] ss:$0 sm:$0xff] }
  0xfe   :  { %762 = vmatpush3.bf16.msra.mxu1 %v761_v7 }
 0x101   :  { %697 = vmatmul.mubr.f32.vlgmr.msra.gmra.mrb[4].mxu1 %v289_v8 }
 0x158   :  { %v542_v11 = vpop.f32.mrb[4].mxu0 }
 0x159   :  { %v717_v12 = vpop.f32.mrb[5].mxu0  ;;  %551 = vrot.lane.b32.xlu1 %v542_v11, %s792_s27 }
 0x1b0   :  { %v202_v13 = vpop.f32.mrb[0].mxu1 }
 0x1b1   :  { %v277_v14 = vadd.f32 %v276_v9, %v202_v13  ;;  %v637_v15 = vpop.f32.mrb[1].mxu1 }
 0x1b3   :  { %v287_v24 = vadd.f32 %v576_v23, %v277_v14 }
 0x1b4   :  { %v374_v16 = vpop.f32.mrb[2].mxu1 }
 0x1b5   :  { %v663_v17 = vpop.f32.mrb[3].mxu1 }
 0x1cb   :  { %v552_v25 = vpop.permute.xlu1 %551 }
 0x1d4   :  { %v444_v18 = vpop.f32.mrb[4].mxu1 }
 0x1d5   :  { %v445_v19 = vadd.f32 %v444_v18, %v374_v16  ;;  %v698_v20 = vpop.f32.mrb[5].mxu1 }
 0x1d7   :  { %v455_v21 = vadd.f32 %v578_v0, %v445_v19 }
 0x1d9   :  { %782 = vtanh.f32 %v455_v21 }
 0x1da   :  { %784 = vtanh.f32 %v287_v24 }
 0x1e3   :  { %v783_v22 = vpop.eup %782 }
 0x1e4   :  { %547 = vrot.lane.b32.xlu0 %v783_v22, %s793_s3  ;;  %v785_v26 = vpop.eup %784 }
 0x256   :  { %v548_v27 = vpop.permute.xlu0 %547 }
 0x257   :  { %v555_v28 = vsel %vm554_vm4, %v785_v26, %v548_v27 }
 0x258   :  { %v556_v29 = vsel %vm206_vm2, %v555_v28, %v552_v25 }
 0x259   :  { %v557_v30 = vmul.f32 %v556_v29, %v556_v29 }
 0x25b   :  { %v559_v31 = vsel %vm558_vm5, %v557_v30, 0.0 }
 0x25c   :  { %560 = vadd.xlane.f32.xlu1 %v559_v31 }
 0x2e9   :  { %v561_v32 = vpop.xlane.xlu1 %560 }
 0x2ea   :  { %v562_v33 = vmax.f32 %v561_v32, 1e-16 }
 0x2ec   :  { %786 = vrsqrt.f32 %v562_v33 }
 0x2f6   :  { %v787_v34 = vpop.eup %786 }
 0x2f7   :  { %v564_v35 = vmul.f32 %v787_v34, %v556_v29 }
 0x2f9   :  { %v565_v36 = vpack.c.bf16 %v564_v35, %v564_v35 }
 0x2fb   :  { %567 = vst.msk [vmem:[%s1041_s11] sm:$0xf] %vm566_vm6, %v565_v36 }

</bundles_post_ra>
